<compile_context>
chip_gen: v6e
topology: v6e:2x2x1
jax: 0.10.0
libtpu: 0.0.40
codegen_flags: <defaults>
</compile_context>

<pallas_src>
import functools
import inspect
import math

import jax
import jax.numpy as jnp
from jax.experimental import pallas as pl
from jax.experimental.pallas import tpu as pltpu

_INV_SQRT2 = 0.7071067811865476


def _round_up(x, m):
    return ((x + m - 1) // m) * m


def _vmem_capacity_bytes():
    """Trace-time physical VMEM per TensorCore; conservative (v7x) fallback."""
    try:
        info = pltpu.get_tpu_info()
        return int(getattr(info, "vmem_capacity_bytes", 64 << 20))
    except Exception:
        return 64 << 20


def _supports_single_buffering():
    """Explicit feature check for BlockSpec(pipeline_mode=pl.Buffered(1))."""
    if not hasattr(pl, "Buffered"):
        return False
    try:
        return "pipeline_mode" in inspect.signature(pl.BlockSpec).parameters
    except (TypeError, ValueError):
        return False


def _embedfc_kernel(x_ref, w1_ref, b1_ref, w2_ref, b2_ref, o_ref, h_ref,
                    *, approximate_gelu):
    j = pl.program_id(1)

    # Layer 1 + GELU only on the first column step of each row block; the f32
    # hidden activation is cached in VMEM and reused by every column step.
    @pl.when(j == 0)
    def _():
        h = jnp.dot(x_ref[...], w1_ref[...], preferred_element_type=jnp.float32)
        h = h + b1_ref[...]                                   # b1 kept in f32
        if approximate_gelu:
            # tanh-approx GELU (EUP path) -- does NOT bit-match torch default.
            h = jax.nn.gelu(h, approximate=True)
        else:
            # Exact (erf-based) GELU in f32, matching torch.nn.GELU() default.
            h = 0.5 * h * (1.0 + jax.lax.erf(h * jnp.float32(_INV_SQRT2)))
        h_ref[...] = h

    # Layer 2: feed the MXU in the weights' native dtype, accumulate in f32.
    h = h_ref[...].astype(w2_ref.dtype)
    out = jnp.dot(h, w2_ref[...], preferred_element_type=jnp.float32)
    out = out + b2_ref[...]                                   # b2 kept in f32
    o_ref[...] = out.astype(o_ref.dtype)


def embed_fc(x, w1, b1, w2, b2, *, row_tile=None, col_tile=None,
             approximate_gelu=False):
    """Pallas implementation of EmbedFC.forward.

    x:  any shape whose trailing elements flatten to (-1, input_dim)
    w1: (input_dim, emb_dim), b1: (emb_dim,)
    w2: (emb_dim, emb_dim),   b2: (emb_dim,)
    returns: (B, emb_dim) with B = x.size // input_dim
    """
    input_dim, emb_dim = w1.shape
    x2d = x.reshape(-1, input_dim)
    B = x2d.shape[0]
    out_dtype = x2d.dtype

    # ---- lane-dense padding of the (small) parameters, once, in the wrapper.
    emb_p = _round_up(emb_dim, 128)
    if emb_p != emb_dim:
        pad = emb_p - emb_dim
        w1 = jnp.pad(w1, ((0, 0), (0, pad)))
        w2 = jnp.pad(w2, ((0, pad), (0, pad)))
        b1 = jnp.pad(b1, (0, pad))
        b2 = jnp.pad(b2, (0, pad))
    b1_2d = b1.reshape(1, emb_p).astype(jnp.float32)
    b2_2d = b2.reshape(1, emb_p).astype(jnp.float32)

    # ---- chip-generation heuristics ----------------------------------------
    vmem_cap = _vmem_capacity_bytes()
    small_vmem = vmem_cap <= (64 << 20)          # v7x-like: 64 MiB/TC, 2 TCs
    num_tc = 2 if small_vmem else 1

    x_it = x2d.dtype.itemsize
    o_it = jnp.dtype(out_dtype).itemsize
    w1_it = w1.dtype.itemsize
    w2_it = w2.dtype.itemsize

    # ---- row tile -----------------------------------------------------------
    sub = max(8, 32 // x_it)                     # 8/f32, 16/bf16, 32/int8
    if row_tile is None:
        max_rt = 512 if emb_p <= 1024 else 256   # keep the f32 h scratch small
        row_tile = min(B, max_rt)
        if num_tc >= 2 and B > 128:
            row_tile = min(row_tile, -(-B // 2))  # >= 2 row blocks for 2 TCs
    row_tile = max(sub, _round_up(row_tile, sub))
    grid_rows = pl.cdiv(B, row_tile)
    b_pad = grid_rows * row_tile                 # padded output rows (sliced)

    # ---- column tile (W2 residency) -----------------------------------------
    w2_budget = (8 << 20) if small_vmem else (40 << 20)
    if col_tile is None:
        if emb_p * emb_p * w2_it <= w2_budget:
            col_tile = emb_p                     # keep W2 fully resident
        else:
            col_tile = max(128, (w2_budget // (emb_p * w2_it)) // 128 * 128)
    col_tile = min(_round_up(col_tile, 128), emb_p)
    grid_cols = pl.cdiv(emb_p, col_tile)

    # ---- single-buffer constant-index weight blocks (explicit feature check)
    single_buf = _supports_single_buffering()
    w1_single = single_buf                        # index map constant in (i, j)
    w2_single = single_buf and grid_cols == 1     # only constant if not N-tiled
    n_w1buf = 1 if w1_single else 2
    n_w2buf = 1 if w2_single else 2

    # ---- explicit VMEM budget (activations + weights + f32 intermediates) ---
    vmem_needed = (
        2 * row_tile * input_dim * x_it                     # x blocks (dbl-buf)
        + 2 * row_tile * col_tile * o_it                    # out blocks
        + n_w1buf * (input_dim * emb_p * w1_it + emb_p * 4)  # W1 + b1
        + n_w2buf * (emb_p * col_tile * w2_it + col_tile * 4)  # W2 + b2
        + row_tile * emb_p * 4                              # f32 h scratch
        + row_tile * col_tile * 4                           # f32 pre-cast out
        + (2 << 20))                                        # Mosaic headroom
    vmem_cap_limit = (48 << 20) if small_vmem else (100 << 20)
    vmem_limit = int(min(max(vmem_needed, 16 << 20), vmem_cap_limit))

    def _wspec(shape, index_map, single):
        if single:
            return pl.BlockSpec(shape, index_map, pipeline_mode=pl.Buffered(1))
        return pl.BlockSpec(shape, index_map)

    kernel = functools.partial(_embedfc_kernel, approximate_gelu=approximate_gelu)

    cost = pl.CostEstimate(
        flops=2 * B * emb_p * (input_dim + emb_p),
        transcendentals=B * emb_p,
        bytes_accessed=(B * input_dim * x_it
                        + input_dim * emb_p * w1_it
                        + emb_p * emb_p * w2_it
                        + 2 * emb_p * 4
                        + B * emb_p * o_it))

    out = pl.pallas_call(
        kernel,
        out_shape=jax.ShapeDtypeStruct((b_pad, emb_p), out_dtype),
        grid_spec=pltpu.PrefetchScalarGridSpec(
            num_scalar_prefetch=0,
            grid=(grid_rows, grid_cols),          # column axis innermost
            in_specs=[
                pl.BlockSpec((row_tile, input_dim), lambda i, j: (i, 0)),   # x
                _wspec((input_dim, emb_p), lambda i, j: (0, 0), w1_single),  # W1
                _wspec((1, emb_p), lambda i, j: (0, 0), w1_single),          # b1
                _wspec((emb_p, col_tile), lambda i, j: (0, j), w2_single),   # W2
                _wspec((1, col_tile), lambda i, j: (0, j), w2_single),       # b2
            ],
            out_specs=pl.BlockSpec((row_tile, col_tile), lambda i, j: (i, j)),
            scratch_shapes=[pltpu.VMEM((row_tile, emb_p), jnp.float32)],     # h
        ),
        compiler_params=pltpu.CompilerParams(
            dimension_semantics=("parallel", "arbitrary"),
            vmem_limit_bytes=vmem_limit),
        cost_estimate=cost,
    )(x2d, w1, b1_2d, w2, b2_2d)

    return out[:B, :emb_dim]


def init_embedfc_params(key, input_dim, emb_dim, dtype=jnp.float32):
    """Deterministic init mirroring nn.Linear default (uniform +-1/sqrt(fan_in))."""
    k1, k2, k3, k4 = jax.random.split(key, 4)
    lim1 = 1.0 / math.sqrt(input_dim)
    lim2 = 1.0 / math.sqrt(emb_dim)
    w1 = jax.random.uniform(k1, (input_dim, emb_dim), dtype, -lim1, lim1)
    b1 = jax.random.uniform(k2, (emb_dim,), dtype, -lim1, lim1)
    w2 = jax.random.uniform(k3, (emb_dim, emb_dim), dtype, -lim2, lim2)
    b2 = jax.random.uniform(k4, (emb_dim,), dtype, -lim2, lim2)
    return w1, b1, w2, b2


if __name__ == "__main__":
    input_dim = 16
    emb_dim = 32

    key = jax.random.PRNGKey(0)
    kx, kp = jax.random.split(key)

    # x: (batch=2, extra=4, input_dim=16) -> view(-1, 16) gives 8 rows.
    x = jax.random.normal(kx, (2, 4, input_dim), dtype=jnp.float32)
    w1, b1, w2, b2 = init_embedfc_params(kp, input_dim, emb_dim)

    out = embed_fc(x, w1, b1, w2, b2)
    out = jax.block_until_ready(out)

    # Reference check in plain JAX (exact erf GELU), same math path.
    x2d = x.reshape(-1, input_dim)
    h = x2d @ w1 + b1
    h = 0.5 * h * (1.0 + jax.lax.erf(h / jnp.sqrt(2.0)))
    ref = h @ w2 + b2
    assert out.shape == (8, emb_dim)
    assert jnp.allclose(out, ref, atol=1e-5, rtol=1e-5)

    print("KERNEL_OK")
</pallas_src>

<mosaic_0001>
module attributes {stable_mosaic.version = 11 : i64} {
  func.func @_embedfc_kernel(%arg0: i32, %arg1: i32, %arg2: memref<8x16xf32, #tpu.memory_space<vmem>>, %arg3: memref<16x128xf32, #tpu.memory_space<vmem>>, %arg4: memref<1x128xf32, #tpu.memory_space<vmem>>, %arg5: memref<128x128xf32, #tpu.memory_space<vmem>>, %arg6: memref<1x128xf32, #tpu.memory_space<vmem>>, %arg7: memref<8x128xf32, #tpu.memory_space<vmem>>, %arg8: memref<8x128xf32, #tpu.memory_space<vmem>>) attributes {dimension_semantics = [#tpu.dimension_semantics<parallel>, #tpu.dimension_semantics<arbitrary>], iteration_bounds = array<i64: 1, 1>, scalar_prefetch = 0 : i64, scratch_operands = 1 : i64, tpu.core_type = #tpu.core_type<tc>, window_params = [{transform_indices = @transform_0, window_bounds = array<i64: 8, 16>}, {pipeline_mode = #tpu.pipeline_mode<synchronous>, transform_indices = @transform_1, window_bounds = array<i64: 16, 128>}, {pipeline_mode = #tpu.pipeline_mode<synchronous>, transform_indices = @transform_2, window_bounds = array<i64: 1, 128>}, {pipeline_mode = #tpu.pipeline_mode<synchronous>, transform_indices = @transform_3, window_bounds = array<i64: 128, 128>}, {pipeline_mode = #tpu.pipeline_mode<synchronous>, transform_indices = @transform_4, window_bounds = array<i64: 1, 128>}, {transform_indices = @transform_5, window_bounds = array<i64: 8, 128>}]} {
    %c0_i32 = arith.constant 0 : i32
    %0 = arith.cmpi eq, %arg1, %c0_i32 : i32
    %1 = arith.extui %0 : i1 to i32
    %c0_i32_0 = arith.constant 0 : i32
    %2 = arith.cmpi ne, %1, %c0_i32_0 : i32
    scf.if %2 {
      %c0_8 = arith.constant 0 : index
      %c0_9 = arith.constant 0 : index
      %10 = vector.load %arg2[%c0_8, %c0_9] : memref<8x16xf32, #tpu.memory_space<vmem>>, vector<8x16xf32>
      %c0_10 = arith.constant 0 : index
      %c0_11 = arith.constant 0 : index
      %11 = vector.load %arg3[%c0_10, %c0_11] : memref<16x128xf32, #tpu.memory_space<vmem>>, vector<16x128xf32>
      %cst_12 = arith.constant dense<0.000000e+00> : vector<8x128xf32>
      %12 = tpu.matmul %10, %11, %cst_12 {dimension_numbers = #tpu.dot_dimension_numbers<[1], [0], [0], [1], [0, 0, 1, 1], [], []>} : vector<8x16xf32>, vector<16x128xf32>, vector<8x128xf32> -> vector<8x128xf32>
      %c0_13 = arith.constant 0 : index
      %c0_14 = arith.constant 0 : index
      %13 = vector.load %arg4[%c0_13, %c0_14] : memref<1x128xf32, #tpu.memory_space<vmem>>, vector<1x128xf32>
      %14 = vector.broadcast %13 : vector<1x128xf32> to vector<8x128xf32>
      %15 = arith.addf %12, %14 : vector<8x128xf32>
      %cst_15 = arith.constant 5.000000e-01 : f32
      %16 = vector.broadcast %cst_15 : f32 to vector<8x128xf32>
      %17 = arith.mulf %16, %15 : vector<8x128xf32>
      %cst_16 = arith.constant 0.707106769 : f32
      %18 = vector.broadcast %cst_16 : f32 to vector<8x128xf32>
      %19 = arith.mulf %15, %18 : vector<8x128xf32>
      %20 = math.erf %19 : vector<8x128xf32>
      %cst_17 = arith.constant 1.000000e+00 : f32
      %21 = vector.broadcast %cst_17 : f32 to vector<8x128xf32>
      %22 = arith.addf %21, %20 : vector<8x128xf32>
      %23 = arith.mulf %17, %22 : vector<8x128xf32>
      %c0_18 = arith.constant 0 : index
      %c0_19 = arith.constant 0 : index
      %24 = vector.load %arg8[%c0_18, %c0_19] : memref<8x128xf32, #tpu.memory_space<vmem>>, vector<8x128xf32>
      tpu.vector_store %arg8[%c0_18, %c0_19], %23 {strides = array<i32>} : memref<8x128xf32, #tpu.memory_space<vmem>>, vector<8x128xf32>,
    } else {
    }
    %c0 = arith.constant 0 : index
    %c0_1 = arith.constant 0 : index
    %3 = vector.load %arg8[%c0, %c0_1] : memref<8x128xf32, #tpu.memory_space<vmem>>, vector<8x128xf32>
    %c0_2 = arith.constant 0 : index
    %c0_3 = arith.constant 0 : index
    %4 = vector.load %arg5[%c0_2, %c0_3] : memref<128x128xf32, #tpu.memory_space<vmem>>, vector<128x128xf32>
    %cst = arith.constant dense<0.000000e+00> : vector<8x128xf32>
    %5 = tpu.matmul %3, %4, %cst {dimension_numbers = #tpu.dot_dimension_numbers<[1], [0], [0], [1], [0, 0, 1, 1], [], []>} : vector<8x128xf32>, vector<128x128xf32>, vector<8x128xf32> -> vector<8x128xf32>
    %c0_4 = arith.constant 0 : index
    %c0_5 = arith.constant 0 : index
    %6 = vector.load %arg6[%c0_4, %c0_5] : memref<1x128xf32, #tpu.memory_space<vmem>>, vector<1x128xf32>
    %7 = vector.broadcast %6 : vector<1x128xf32> to vector<8x128xf32>
    %8 = arith.addf %5, %7 : vector<8x128xf32>
    %c0_6 = arith.constant 0 : index
    %c0_7 = arith.constant 0 : index
    %9 = vector.load %arg7[%c0_6, %c0_7] : memref<8x128xf32, #tpu.memory_space<vmem>>, vector<8x128xf32>
    tpu.vector_store %arg7[%c0_6, %c0_7], %8 {strides = array<i32>} : memref<8x128xf32, #tpu.memory_space<vmem>>, vector<8x128xf32>,
    return
  }
  func.func @transform_0(%arg0: i32, %arg1: i32) -> (i32, i32) {
    %c0_i32 = arith.constant 0 : i32
    %c0_i32_0 = arith.constant 0 : i32
    return %arg0, %c0_i32 : i32, i32
  }
  func.func @transform_1(%arg0: i32, %arg1: i32) -> (i32, i32) {
    %c0_i32 = arith.constant 0 : i32
    %c0_i32_0 = arith.constant 0 : i32
    %c0_i32_1 = arith.constant 0 : i32
    return %c0_i32, %c0_i32_0 : i32, i32
  }
  func.func @transform_2(%arg0: i32, %arg1: i32) -> (i32, i32) {
    %c0_i32 = arith.constant 0 : i32
    %c0_i32_0 = arith.constant 0 : i32
    %c0_i32_1 = arith.constant 0 : i32
    return %c0_i32, %c0_i32_0 : i32, i32
  }
  func.func @transform_3(%arg0: i32, %arg1: i32) -> (i32, i32) {
    %c0_i32 = arith.constant 0 : i32
    %c0_i32_0 = arith.constant 0 : i32
    return %c0_i32, %arg1 : i32, i32
  }
  func.func @transform_4(%arg0: i32, %arg1: i32) -> (i32, i32) {
    %c0_i32 = arith.constant 0 : i32
    %c0_i32_0 = arith.constant 0 : i32
    return %c0_i32, %arg1 : i32, i32
  }
  func.func @transform_5(%arg0: i32, %arg1: i32) -> (i32, i32) {
    %c0_i32 = arith.constant 0 : i32
    return %arg0, %arg1 : i32, i32
  }
}

</mosaic_0001>

<bundles_post_ra>
// kernel: tpu_custom_call.1
= control target key start
LH: loop header
LB: loop body
LE: loop exit
PB: predicated region body
PF: predicated region fallthrough
CT: control target
= control target key end

     0   :  { %10 = vsyncpa [#allocation4], 0  ;;  %s482_s0 = inlined_call_operand.hbm [shape: f32[8,16], index: 0, kind: input, shape index: {}]   ;;  %s483_s1 = inlined_call_operand.hbm [shape: f32[16,128], index: 1, kind: input, shape index: {}]   ;;  %s484_s2 = inlined_call_operand.vmem [shape: f32[1,128], index: 2, kind: input, shape index: {}]   ;;  %s485_s3 = inlined_call_operand.hbm [shape: f32[128,128], index: 3, kind: input, shape index: {}]   ;;  %s486_s4 = inlined_call_operand.vmem [shape: f32[1,128], index: 4, kind: input, shape index: {}]   ;;  %s487_s5 = inlined_call_operand.hbm [shape: f32[8,128], index: 5, kind: output, shape index: {}]  }
   0x1   :  { %11 = vsyncpa [#allocation7], 0 }
   0x2   :  { %12 = vsyncpa [#allocation5], 0  ;;  %s426_s18 = smov [#allocation6]  }
   0x3   :  { %s28_s19 = sshll.u32 %s426_s18, 4  ;;  %s29_s19 = int_to_ptr.vmem [resolvable:$true] %s28_s19 }
   0x4   :  { %s348_s20 = scalar_lea.vmem %s29_s19, 256  ;;  %p353_p1 = scmp.lt.s32.totalorder %s29_s19, %s29_s19 }
   0x5   :  { %p349_p0 = scmp.ne.s32.totalorder %s29_s19, %s348_s20  ;;  %p354_p2 = scmp.lt.s32.totalorder %s348_s20, %s348_s20 }
   0x7   :  { %p355_p3 = por %p354_p2, %p353_p1 }
   0x9   :  { %p356_p4 = pnand %p355_p3, %p349_p0 }
   0xb   :  { %359 = shalt.err (!%p356_p4)
}
   0xc   :  { %s427_s21 = smov 128   ;;  %s428_s22 = smov 8  }
   0xd   :  { %34 = dma.hbm_to_vmem [thread:$0]  %s483_s1, 256, %s29_s19, [#allocation7], %s427_s21, %s427_s21, %s428_s22  }
   0xe   :  { %s429_s25 = smov [#allocation3]   ;;  %s430_s27 = smov [#allocation8]  }
   0xf   :  { %s19_s26 = sshll.u32 %s429_s25, 4  ;;  %s42_s28 = sshll.u32 %s430_s27, 4  ;;  %s20_s26 = int_to_ptr.vmem [resolvable:$true] %s19_s26  ;;  %s43_s28 = int_to_ptr.vmem [resolvable:$true] %s42_s28 }
  0x10   :  { %s368_s29 = scalar_lea.vmem %s20_s26, 128  ;;  %p373_p6 = scmp.lt.s32.totalorder %s20_s26, %s20_s26 }
  0x11   :  { %p369_p5 = scmp.ne.s32.totalorder %s20_s26, %s368_s29  ;;  %p374_p7 = scmp.lt.s32.totalorder %s368_s29, %s368_s29 }
  0x13   :  { %p375_p8 = por %p374_p7, %p373_p6 }
  0x15   :  { %p376_p9 = pnand %p375_p8, %p369_p5 }
  0x17   :  { %379 = shalt.err (!%p376_p9)
}
  0x18   :  { %22 = dma.hbm_to_vmem [thread:$0]  %s482_s0, 128, %s20_s26, [#allocation4]  }
  0x19   :  { %s388_s7 = scalar_lea.vmem %s43_s28, 2048  ;;  %p393_p11 = scmp.lt.s32.totalorder %s43_s28, %s43_s28 }
  0x1a   :  { %p389_p10 = scmp.ne.s32.totalorder %s43_s28, %s388_s7  ;;  %p394_p12 = scmp.lt.s32.totalorder %s388_s7, %s388_s7 }
  0x1c   :  { %p395_p13 = por %p394_p12, %p393_p11 }
  0x1e   :  { %p396_p0 = pnand %p395_p13, %p389_p10 }
  0x20   :  { %399 = shalt.err (!%p396_p0)
}
  0x21   :  { %48 = dma.hbm_to_vmem [thread:$0]  %s485_s3, 2048, %s43_s28, [#allocation7], %s427_s21, %s427_s21, %s428_s22  }
  0x22   :  { %420 = dma.done.wait [#allocation4], 128  }
  0x23   :  { %421 = vsyncadd [#allocation4], 4294967168 }
  0x24   :  { %422 = dma.done.wait [#allocation7], 2304  }
  0x25   :  { %423 = vsyncadd [#allocation7], 4294964992  ;;  %v431_v0 = vmov 0.0   ;;  %vm432_vm0 = vmmov 0   ;;  %v66_v1 = vld [vmem:[#allocation6 + $0x8] sm:$0xff]  ;;  %v65_v2 = vld [vmem:[#allocation6] sm:$0xff] }
  0x26   :  { %288 = vmatprep.subr.mxu0 %v431_v0  ;;  %292 = vmatprep.mubr.msk.f32.mxu0 %vm432_vm0, %v431_v0  ;;  %v64_v3 = vld [vmem:[#allocation3] sm:$0xff]  ;;  %vm74_vm1 = vcmask 130048   ;;  %v170_v4 = vld [vmem:[#allocation8 + $0x78] sm:$0xff]  ;;  %v169_v5 = vld [vmem:[#allocation8 + $0x70] sm:$0xff]  ;;  %s433_s11 = smov [#allocation9]  }
  0x27   :  { %295 = vmatprep.subr.mxu1 %v431_v0  ;;  %327 = vmatprep.mubr.msk.f32.mxu1 %vm432_vm0, %v431_v0  ;;  %v168_v6 = vld [vmem:[#allocation8 + $0x68] sm:$0xff]  ;;  %v167_v7 = vld [vmem:[#allocation8 + $0x60] sm:$0xff]  ;;  %v166_v8 = vld [vmem:[#allocation8 + $0x58] sm:$0xff]  ;;  %s255_s12 = sshll.u32 %s433_s11, 4  ;;  %s256_s12 = int_to_ptr.vmem [resolvable:$true] %s255_s12 }
  0x28   :  { %289 = vmatpush3.msra.mxu0 %v66_v1  ;;  %296 = vmatpush3.msra.mxu1 %v170_v4  ;;  %v165_v9 = vld [vmem:[#allocation8 + $0x50] sm:$0xff]  ;;  %v164_v10 = vld [vmem:[#allocation8 + $0x48] sm:$0xff]  ;;  %v163_v11 = vld [vmem:[#allocation8 + $0x40] sm:$0xff]  ;;  %p405_p2 = scmp.lt.s32.totalorder %s256_s12, %s256_s12 }
  0x29   :  { %290 = vmatprep.subr.mxu0 %v431_v0  ;;  %297 = vmatprep.subr.mxu1 %v431_v0  ;;  %v162_v12 = vld [vmem:[#allocation8 + $0x38] sm:$0xff]  ;;  %v161_v13 = vld [vmem:[#allocation8 + $0x30] sm:$0xff]  ;;  %v160_v14 = vld [vmem:[#allocation8 + $0x28] sm:$0xff] }
  0x2a   :  { %291 = vmatpush3.msra.mxu0 %v65_v2  ;;  %298 = vmatpush3.msra.mxu1 %v169_v5  ;;  %v159_v15 = vld [vmem:[#allocation8 + $0x20] sm:$0xff]  ;;  %v158_v16 = vld [vmem:[#allocation8 + $0x18] sm:$0xff]  ;;  %v157_v17 = vld [vmem:[#allocation8 + $0x10] sm:$0xff] }
  0x2b   :  { %293 = vmatmul.mubr.msk.f32.vlgmr.msra.gmra.mxu0 %vm74_vm1, %v64_v3  ;;  %299 = vmatprep.subr.mxu1 %v431_v0  ;;  %v156_v18 = vld [vmem:[#allocation8 + $0x8] sm:$0xff]  ;;  %v155_v19 = vld [vmem:[#allocation8] sm:$0xff] }
  0x2c   :  { %300 = vmatpush3.msra.mxu1 %v168_v6  ;;  %v265_v20 = vld [vmem:[%s484_s2] ss:$0 sm:$0xff]  ;;  %s400_s2 = scalar_lea.vmem %s256_s12, 128 }
  0x2d   :  { %301 = vmatprep.subr.mxu1 %v431_v0  ;;  %v267_v29 = vld [vmem:[%s486_s4] ss:$0 sm:$0xff]  ;;  %p401_p1 = scmp.ne.s32.totalorder %s256_s12, %s400_s2  ;;  %p406_p3 = scmp.lt.s32.totalorder %s400_s2, %s400_s2 }
  0x2e   :  { %302 = vmatpush3.msra.mxu1 %v167_v7 }
  0x2f   :  { %303 = vmatprep.subr.mxu1 %v431_v0  ;;  %p407_p4 = por %p406_p3, %p405_p2 }
  0x30   :  { %304 = vmatpush3.msra.mxu1 %v166_v8 }
  0x31   :  { %305 = vmatprep.subr.mxu1 %v431_v0  ;;  %p408_p5 = pnand %p407_p4, %p401_p1 }
  0x32   :  { %306 = vmatpush3.msra.mxu1 %v165_v9 }
  0x33   :  { %307 = vmatprep.subr.mxu1 %v431_v0 }
  0x34   :  { %308 = vmatpush3.msra.mxu1 %v164_v10 }
  0x35   :  { %309 = vmatprep.subr.mxu1 %v431_v0 }
  0x36   :  { %310 = vmatpush3.msra.mxu1 %v163_v11 }
  0x37   :  { %311 = vmatprep.subr.mxu1 %v431_v0 }
  0x38   :  { %312 = vmatpush3.msra.mxu1 %v162_v12 }
  0x39   :  { %313 = vmatprep.subr.mxu1 %v431_v0 }
  0x3a   :  { %314 = vmatpush3.msra.mxu1 %v161_v13 }
  0x3b   :  { %315 = vmatprep.subr.mxu1 %v431_v0 }
  0x3c   :  { %316 = vmatpush3.msra.mxu1 %v160_v14 }
  0x3d   :  { %317 = vmatprep.subr.mxu1 %v431_v0 }
  0x3e   :  { %318 = vmatpush3.msra.mxu1 %v159_v15 }
  0x3f   :  { %319 = vmatprep.subr.mxu1 %v431_v0 }
  0x40   :  { %320 = vmatpush3.msra.mxu1 %v158_v16 }
  0x41   :  { %321 = vmatprep.subr.mxu1 %v431_v0 }
  0x42   :  { %322 = vmatpush3.msra.mxu1 %v157_v17 }
  0x43   :  { %323 = vmatprep.subr.mxu1 %v431_v0 }
  0x44   :  { %324 = vmatpush3.msra.mxu1 %v156_v18 }
  0x45   :  { %325 = vmatprep.subr.mxu1 %v431_v0 }
  0x46   :  { %326 = vmatpush3.msra.mxu1 %v155_v19 }
  0xeb   :  { %v144_v21 = vpop.f32.mrf.mxu0 }
  0xec   :  { %v145_v22 = vadd.f32 %v265_v20, %v144_v21 }
  0xed   :  { %v294_v23 = vpop.f32.mrf.mxu0 }
  0xee   :  { %v149_v24 = vmul.f32 0.70710677, %v145_v22  ;;  %v148_v26 = vmul.f32 0.5, %v145_v22 }
  0xf0   :  { %338 = verf.f32 %v149_v24 }
  0xfd   :  { %v339_v25 = vpop.eup %338 }
  0xfe   :  { %v151_v27 = vadd.f32 1.0, %v339_v25 }
 0x100   :  { %v152_v28 = vmul.f32 %v151_v27, %v148_v26 }
 0x102   :  { %328 = vmatmul.mubr.f32.vlgmr.msra.gmra.mxu1 %v152_v28 }
 0x1c2   :  { %v244_v30 = vpop.f32.mrf.mxu1 }
 0x1c3   :  { %v245_v31 = vadd.f32 %v267_v29, %v244_v30 }
 0x1c4   :  { %v329_v32 = vpop.f32.mrf.mxu1 }
 0x1c5   :  { %248 = vst [vmem:[#allocation9] sm:$0xff] %v245_v31 }
 0x1c6   :  { %411 = shalt.err (!%p408_p5)
}
 0x1c7   :  { %258 = dma.vmem_to_hbm [thread:$0]  %s256_s12, 128, %s487_s5, [#allocation5]  }
 0x1c8   :  { %424 = dma.done.wait [#allocation5], 128  }
 0x1c9   :  { %425 = vsyncadd [#allocation5], 4294967168 }
 0x1ca   :  { %262 = vsyncpa [#allocation4], 1 }
 0x1cb   :  { %263 = vsyncpa [#allocation7], 1 }
 0x1cc   :  { %264 = vsyncpa [#allocation5], 1 }

</bundles_post_ra>
